<compile_context>
chip_gen: v6e
topology: v6e:2x2x1
jax: 0.10.0
libtpu: 0.0.40
codegen_flags: <defaults>
</compile_context>

<pallas_src>
import numpy as np
import jax
import jax.numpy as jnp
from jax.experimental import pallas as pl
from jax.experimental.pallas import tpu as pltpu

SIZES = (1, 2, 3, 6)


# ---------------------------------------------------------------------------
# Host-side construction of the per-group pool / upsample matrices.
# ---------------------------------------------------------------------------
def _pool_matrix(s, n):
    """1-D AdaptiveAvgPool (PyTorch region rule) as a dense (s, n) matrix."""
    P = np.zeros((s, n), dtype=np.float32)
    for i in range(s):
        lo = (i * n) // s                       # floor(i*n/s)
        hi = ((i + 1) * n + s - 1) // s         # ceil((i+1)*n/s)
        P[i, lo:hi] = 1.0 / (hi - lo)
    return P


def _upsample_matrix(n, s):
    """1-D bilinear upsample s -> n, align_corners=False (F.upsample default),
    as a dense (n, s) matrix."""
    # TODO(synk): if the original checkpoint relied on align_corners=True
    # semantics, this matrix (and only this matrix) must be rebuilt.
    U = np.zeros((n, s), dtype=np.float32)
    scale = s / n
    for o in range(n):
        src = max((o + 0.5) * scale - 0.5, 0.0)
        i0 = min(int(np.floor(src)), s - 1)
        i1 = min(i0 + 1, s - 1)
        lam = src - i0
        U[o, i0] += 1.0 - lam
        U[o, i1] += lam
    return U


def _build_group_matrices(H, W, sizes, sp):
    """A[g]  : (H*W, sp)  so that  pooled = x_flat @ A[g]   (zero-padded cols)
       Bm[g] : (sp, H*W)  so that  y      = pooled @ Bm[g]  (zero-padded rows)"""
    HW = H * W
    G = len(sizes)
    A = np.zeros((G, HW, sp), dtype=np.float32)
    Bm = np.zeros((G, sp, HW), dtype=np.float32)
    for g, s in enumerate(sizes):
        Ph, Pw = _pool_matrix(s, H), _pool_matrix(s, W)       # (s,H), (s,W)
        Uh, Uw = _upsample_matrix(H, s), _upsample_matrix(W, s)  # (H,s), (W,s)
        A[g, :, : s * s] = np.kron(Ph, Pw).T                  # (H*W, s*s)
        Bm[g, : s * s, :] = np.kron(Uh, Uw).T                 # (s*s, H*W)
    return A, Bm


# ---------------------------------------------------------------------------
# Pallas kernel: one (group, channel-tile, batch-tile) block per grid step.
# ---------------------------------------------------------------------------
def _low_pass_kernel(a_ref, b_ref, x_ref, o_ref):
    # a_ref : (HW, SP)        pool matrix (group-resident across inner steps)
    # b_ref : (SP, HW)        upsample matrix
    # x_ref : (tb, ct, HW)    lane-dense input block
    # o_ref : (tb, ct, HW)
    tb, ct, hw = x_ref.shape
    xm = x_ref[...].reshape(tb * ct, hw)                 # collapse leading dims only
    pooled = jnp.dot(xm, a_ref[...], preferred_element_type=jnp.float32)
    pooled = pooled.astype(xm.dtype)                     # keep MXU-native operand dtype
    y = jnp.dot(pooled, b_ref[...], preferred_element_type=jnp.float32)
    o_ref[...] = jnp.maximum(y, 0.0).astype(o_ref.dtype).reshape(tb, ct, hw)


def low_pass_module(x, sizes=SIZES, block_budget_bytes=2 * 1024 * 1024):
    """x: (B, C, H, W), C divisible by len(sizes). Returns same shape & dtype."""
    B, C, H, W = x.shape
    G = len(sizes)
    assert C % G == 0, "in_channel must be divisible by 4"
    ch = C // G
    HW = H * W
    SP = max(s * s for s in sizes)

    A_np, B_np = _build_group_matrices(H, W, sizes, SP)
    # Ship the mixing matrices in the input dtype (bf16 inputs -> bf16 MXU ops).
    A = jnp.asarray(A_np, dtype=x.dtype)
    Bm = jnp.asarray(B_np, dtype=x.dtype)

    elt = jnp.dtype(x.dtype).itemsize
    # Channel tile: only shrink below ch if the result stays 8-sublane aligned
    # (needed when ch*H*W is large, e.g. on v7x's 64 MiB VMEM).
    ct = ch
    while ct * HW * elt > block_budget_bytes and ct % 2 == 0 and (ct // 2) % 8 == 0:
        ct //= 2
    # Batch tile: grow while it divides B and the block stays under budget.
    tb = 1
    while B % (tb * 2) == 0 and (tb * 2) * ct * HW * elt <= block_budget_bytes:
        tb *= 2

    # Free row-major reshape: channel groups are contiguous chunks, spatial
    # dims flatten to a lane-dense (>=128 for typical H*W) last axis.
    xf = x.reshape(B, G, ch, HW)

    grid = (G, ch // ct, B // tb)   # group axis outermost -> matrices stay resident

    cost = pl.CostEstimate(
        flops=4 * B * C * HW * SP,
        transcendentals=0,
        bytes_accessed=2 * B * C * HW * elt + 2 * G * HW * SP * elt,
    )

    out = pl.pallas_call(
        _low_pass_kernel,
        out_shape=jax.ShapeDtypeStruct((B, G, ch, HW), x.dtype),
        grid=grid,
        in_specs=[
            pl.BlockSpec((None, HW, SP), lambda g, c, b: (g, 0, 0)),       # pool matrix
            pl.BlockSpec((None, SP, HW), lambda g, c, b: (g, 0, 0)),       # upsample matrix
            pl.BlockSpec((tb, None, ct, HW), lambda g, c, b: (b, g, c, 0)),  # x block
        ],
        out_specs=pl.BlockSpec((tb, None, ct, HW), lambda g, c, b: (b, g, c, 0)),
        compiler_params=pltpu.CompilerParams(
            dimension_semantics=("parallel", "parallel", "parallel"),
            vmem_limit_bytes=32 * 1024 * 1024),
        cost_estimate=cost,
    )(A, Bm, xf)

    return out.reshape(B, C, H, W)


# ---------------------------------------------------------------------------
# Independent pure-JAX reference (gather + lerp, no matmuls).
# ---------------------------------------------------------------------------
def _reference(x, sizes=SIZES):
    B, C, H, W = x.shape
    ch = C // len(sizes)
    outs = []
    for g, s in enumerate(sizes):
        xg = x[:, g * ch:(g + 1) * ch].astype(jnp.float32)
        rows = [(int(np.floor(i * H / s)), int(np.ceil((i + 1) * H / s))) for i in range(s)]
        cols = [(int(np.floor(j * W / s)), int(np.ceil((j + 1) * W / s))) for j in range(s)]
        pooled = jnp.stack(
            [jnp.stack([xg[:, :, r0:r1, c0:c1].mean(axis=(2, 3)) for (c0, c1) in cols], axis=-1)
             for (r0, r1) in rows], axis=-2)                           # (B, ch, s, s)

        def up_idx(n_out, n_in):
            o = np.arange(n_out)
            src = np.maximum((o + 0.5) * (n_in / n_out) - 0.5, 0.0)
            i0 = np.minimum(np.floor(src).astype(np.int32), n_in - 1)
            i1 = np.minimum(i0 + 1, n_in - 1)
            lam = (src - i0).astype(np.float32)
            return i0, i1, lam

        r0, r1, rl = up_idx(H, s)
        c0, c1, cl = up_idx(W, s)
        rl_ = jnp.asarray(rl).reshape(1, 1, H, 1)
        mixed = pooled[:, :, r0, :] * (1.0 - rl_) + pooled[:, :, r1, :] * rl_   # (B, ch, H, s)
        cl_ = jnp.asarray(cl).reshape(1, 1, 1, W)
        outs.append(mixed[:, :, :, c0] * (1.0 - cl_) + mixed[:, :, :, c1] * cl_)
    return jnp.maximum(jnp.concatenate(outs, axis=1), 0.0)


if __name__ == "__main__":
    B, C, H, W = 2, 8, 16, 16   # C divisible by 4 -> ch = 2 per group
    x = jax.random.normal(jax.random.PRNGKey(0), (B, C, H, W), dtype=jnp.float32)

    out = jax.block_until_ready(low_pass_module(x))
    ref = _reference(x)

    assert out.shape == (B, C, H, W)
    assert out.dtype == x.dtype
    assert jnp.allclose(out, ref, atol=2e-2, rtol=2e-2), "mismatch vs reference"
    print("KERNEL_OK")
</pallas_src>

<mosaic_0001>
module attributes {stable_mosaic.version = 11 : i64} {
  func.func @_low_pass_kernel(%arg0: i32, %arg1: i32, %arg2: i32, %arg3: memref<1x256x36xf32, #tpu.memory_space<vmem>>, %arg4: memref<1x36x256xf32, #tpu.memory_space<vmem>>, %arg5: memref<2x1x2x256xf32, #tpu.memory_space<vmem>>, %arg6: memref<2x1x2x256xf32, #tpu.memory_space<vmem>>) attributes {dimension_semantics = [#tpu.dimension_semantics<parallel>, #tpu.dimension_semantics<parallel>, #tpu.dimension_semantics<parallel>], iteration_bounds = array<i64: 4, 1, 1>, scalar_prefetch = 0 : i64, scratch_operands = 0 : i64, tpu.core_type = #tpu.core_type<tc>, window_params = [{transform_indices = @transform_0, window_bounds = array<i64: 1, 256, 36>}, {transform_indices = @transform_1, window_bounds = array<i64: 1, 36, 256>}, {transform_indices = @transform_2, window_bounds = array<i64: 2, 1, 2, 256>}, {transform_indices = @transform_3, window_bounds = array<i64: 2, 1, 2, 256>}]} {
    %c0 = arith.constant 0 : index
    %c0_0 = arith.constant 0 : index
    %c0_1 = arith.constant 0 : index
    %c0_2 = arith.constant 0 : index
    %0 = vector.load %arg5[%c0, %c0_0, %c0_1, %c0_2] : memref<2x1x2x256xf32, #tpu.memory_space<vmem>>, vector<2x1x2x256xf32>
    %1 = vector.shape_cast %0 : vector<2x1x2x256xf32> to vector<2x2x256xf32>
    %2 = vector.shape_cast %1 : vector<2x2x256xf32> to vector<4x256xf32>
    %c0_3 = arith.constant 0 : index
    %c0_4 = arith.constant 0 : index
    %c0_5 = arith.constant 0 : index
    %3 = vector.load %arg3[%c0_3, %c0_4, %c0_5] : memref<1x256x36xf32, #tpu.memory_space<vmem>>, vector<1x256x36xf32>
    %4 = vector.shape_cast %3 : vector<1x256x36xf32> to vector<256x36xf32>
    %cst = arith.constant dense<0.000000e+00> : vector<4x36xf32>
    %5 = tpu.matmul %2, %4, %cst {dimension_numbers = #tpu.dot_dimension_numbers<[1], [0], [0], [1], [0, 0, 1, 1], [], []>} : vector<4x256xf32>, vector<256x36xf32>, vector<4x36xf32> -> vector<4x36xf32>
    %c0_6 = arith.constant 0 : index
    %c0_7 = arith.constant 0 : index
    %c0_8 = arith.constant 0 : index
    %6 = vector.load %arg4[%c0_6, %c0_7, %c0_8] : memref<1x36x256xf32, #tpu.memory_space<vmem>>, vector<1x36x256xf32>
    %7 = vector.shape_cast %6 : vector<1x36x256xf32> to vector<36x256xf32>
    %cst_9 = arith.constant dense<0.000000e+00> : vector<4x256xf32>
    %8 = tpu.matmul %5, %7, %cst_9 {dimension_numbers = #tpu.dot_dimension_numbers<[1], [0], [0], [1], [0, 0, 1, 1], [], []>} : vector<4x36xf32>, vector<36x256xf32>, vector<4x256xf32> -> vector<4x256xf32>
    %cst_10 = arith.constant 0.000000e+00 : f32
    %9 = vector.broadcast %cst_10 : f32 to vector<4x256xf32>
    %10 = arith.maximumf %8, %9 : vector<4x256xf32>
    %11 = vector.shape_cast %10 : vector<4x256xf32> to vector<2x2x256xf32>
    %c0_11 = arith.constant 0 : index
    %c0_12 = arith.constant 0 : index
    %c0_13 = arith.constant 0 : index
    %c0_14 = arith.constant 0 : index
    %12 = vector.load %arg6[%c0_11, %c0_12, %c0_13, %c0_14] : memref<2x1x2x256xf32, #tpu.memory_space<vmem>>, vector<2x1x2x256xf32>
    %13 = vector.shape_cast %12 : vector<2x1x2x256xf32> to vector<2x2x256xf32>
    %14 = vector.shape_cast %11 : vector<2x2x256xf32> to vector<2x1x2x256xf32>
    tpu.vector_store %arg6[%c0_11, %c0_12, %c0_13, %c0_14], %14 {strides = array<i32>} : memref<2x1x2x256xf32, #tpu.memory_space<vmem>>, vector<2x1x2x256xf32>,
    return
  }
  func.func @transform_0(%arg0: i32, %arg1: i32, %arg2: i32) -> (i32, i32, i32) {
    %c0_i32 = arith.constant 0 : i32
    %c0_i32_0 = arith.constant 0 : i32
    %c0_i32_1 = arith.constant 0 : i32
    return %arg0, %c0_i32, %c0_i32_0 : i32, i32, i32
  }
  func.func @transform_1(%arg0: i32, %arg1: i32, %arg2: i32) -> (i32, i32, i32) {
    %c0_i32 = arith.constant 0 : i32
    %c0_i32_0 = arith.constant 0 : i32
    %c0_i32_1 = arith.constant 0 : i32
    return %arg0, %c0_i32, %c0_i32_0 : i32, i32, i32
  }
  func.func @transform_2(%arg0: i32, %arg1: i32, %arg2: i32) -> (i32, i32, i32, i32) {
    %c0_i32 = arith.constant 0 : i32
    %c0_i32_0 = arith.constant 0 : i32
    return %arg2, %arg0, %arg1, %c0_i32 : i32, i32, i32, i32
  }
  func.func @transform_3(%arg0: i32, %arg1: i32, %arg2: i32) -> (i32, i32, i32, i32) {
    %c0_i32 = arith.constant 0 : i32
    %c0_i32_0 = arith.constant 0 : i32
    return %arg2, %arg0, %arg1, %c0_i32 : i32, i32, i32, i32
  }
}

</mosaic_0001>

<bundles_post_ra>
// kernel: tpu_custom_call.1
= control target key start
LH: loop header
LB: loop body
LE: loop exit
PB: predicated region body
PF: predicated region fallthrough
CT: control target
= control target key end

     0   :  { %8 = vsyncpa [#allocation4], 0  ;;  %s1066_s0 = inlined_call_operand.vmem [shape: f32[4,256,36], index: 0, kind: input, shape index: {}]   ;;  %s1067_s1 = inlined_call_operand.vmem [shape: f32[4,36,256], index: 1, kind: input, shape index: {}]   ;;  %s1068_s2 = inlined_call_operand.vmem [shape: f32[2,4,2,256], index: 2, kind: input, shape index: {}]   ;;  %s1069_s3 = inlined_call_operand.hbm [shape: f32[2,4,2,256], index: 3, kind: output, shape index: {}]  }
   0x1   :  { %10 = vsyncpa [#allocation4 + $0x1], 0  ;;  %s876_s12 = smov 0   ;;  %s878_s13 = smov 0  }
   0x2   :  { %s880_s14 = smov 0   ;;  %s882_s15 = smov 0  }
   0x3   :  { %s884_s16 = smov 0   ;;  %s886_s17 = smov 0  }
   0x4 LB: > { %s649_s18 = sadd.s32 4294967295, %s848_s17   ;;  %s650_s19 = sadd.s32 4294967294, %s848_s17   ;;  %s848_s17 = sphi %s886_s17, %s16_s17   ;;  %s844_s16 = sphi %s884_s16, %s1076_s16   ;;  %s840_s15 = sphi %s882_s15, %s1075_s15   ;;  %s836_s14 = sphi %s880_s14, %s1074_s14   ;;  %s832_s13 = sphi %s878_s13, %s1073_s13   ;;  %s828_s12 = sphi %s876_s12, %s1072_s12  }
   0x5   : > { %s35_s20 = sadd.s32 1, %s844_s16  ;;  %s98_s21 = sadd.s32 1, %s836_s14 }
   0x6   : > { %p37_p0 = scmp.ge.s32.totalorder %s35_s20, 4  ;;  %p105_p1 = scmp.ne.s32.totalorder %s836_s14, %s832_s13 }
   0x7   : > { %p106_p2 = scmp.eq.s32.totalorder %s848_s17, 0  ;;  %p139_p3 = scmp.eq.s32.totalorder %s649_s18, 3 }
   0x8   : > { %s1078_s20 = smov (%p37_p0, %s35_s20), 0  ;;  %p144_p6 = scmp.ne.s32.totalorder %s832_s13, %s828_s12 }
   0x9   : > { %p107_p4 = por %p106_p2, %p105_p1  ;;  %p915_p5 = por %p139_p3, %p105_p1 }
   0xa   : > { %s92_s23 = ssub.s32 %s844_s16, %s1078_s20  ;;  %p145_p8 = scmp.eq.s32.totalorder %s650_s19, 3 }
   0xb   : > { %p96_p7 = scmp.eq.s32.totalorder %s92_s23, 0  ;;  %p652_p10 = scmp.ge.s32.totalorder %s848_s17, 4 }
   0xc   : > { %p926_p9 = por %p145_p8, %p144_p6 }
   0xd   : > { %s924_s24 = scalar_select %p96_p7, %s836_s14, %s98_s21  }
   0xe   : > { %161 = sbr.rel (%p652_p10) target bundleno = 24 (0x18), region = 16 }
  0x13   : > { %180 = sbr.rel (!%p107_p4) target bundleno = 24 (0x18), region = 28  ;;  %s182_s26 = sand.u32 (%p107_p4), 1, %s836_s14  }
  0x14   : > { %s671_s27 = sshll.u32 (%p107_p4), %s844_s16, 2  ;;  %s653_s28 = sshll.u32 (%p107_p4), %s182_s26, 3 }
  0x15   : > { %s192_s4 = scalar_lea.vmem (%p107_p4), %s1068_s2, %s671_s27  ;;  %s184_s5 = scalar_lea.vmem (%p107_p4), [#allocation2], %s653_s28 }
  0x16   : > { %v209_v0 = vld [vmem:[%s192_s4] sm:$0xf] (%p107_p4)  ;;  %v211_v1 = vld [vmem:[%s192_s4 + $0x10] sm:$0xf] (%p107_p4) }
  0x17   : > { %210 = vst [vmem:[%s184_s5] sm:$0xf] (%p107_p4), %v209_v0  ;;  %212 = vst [vmem:[%s184_s5 + $0x4] sm:$0xf] (%p107_p4), %v211_v1 }
  0x18 PF: > { %p656_p11 = scmp.ge.s32.totalorder %s848_s17, 1  ;;  %p239_p12 = scmp.lt.s32.totalorder %s848_s17, 5 }
  0x1a   : > { %p240_p13 = pnand %p656_p11, %p239_p12 }
  0x1b   : > { %p279_p0 = scmp.lt.s32.totalorder (!%p240_p13), %s840_s15, 3  ;;  %s246_s6 = sand.u32 (!%p240_p13), 1, %s832_s13  }
  0x1c   : > { %243 = sbr.rel (%p240_p13) target bundleno = 485 (0x1e5), region = 69  ;;  %s942_s7 = sshll.u32 (!%p240_p13), %s246_s6, 3 }
  0x1d   : > { %s248_s10 = scalar_lea.vmem (!%p240_p13), [#allocation2], %s942_s7  ;;  %s278_s28 = scalar_lea.vmem (!%p240_p13), [#allocation3], %s942_s7 }
  0x1e   : > { %s536_s29 = sshll.u32 (!%p240_p13), %s278_s28, 4  ;;  %s673_s30 = sshll.u32 (!%p240_p13), %s840_s15, 6  ;;  %s1012_s29 = int_to_ptr.vmem [resolvable:$true] %s536_s29 }
  0x1f   : > { %s1021_s7 = scalar_lea.sflag (!%p240_p13), [#allocation4], %s246_s6 }
  0x21   : > { %v331_v2 = vlaneseq  ;;  %v850_v3 = vmov 1983009808   ;;  %s945_s8 = scalar_select %p279_p0, %s840_s15, 3  ;;  %v949_v7 = vld.sshfl [vmem:[%s248_s10] sm:$0xff pattern:$0x76325410] }
  0x22   : > { %v329_v4 = vunpack.c.l.s4 %v850_v3  ;;  %v335_v15 = vcombine.high %v949_v7, %v949_v7  ;;  %vm422_vm0 = vcmask 1043456   ;;  %v851_v52 = vmov 0.0   ;;  %s852_s15 = smov [#allocation3]  }
  0x23   : > { %v332_v5 = vshrl.u32 %v331_v2, 7  ;;  %s672_s9 = sshll.u32 %s945_s8, 8  ;;  %s709_s21 = smul.u32 80, %s945_s8  ;;  %493 = vmatprep.mubr.f32.mxu1 %v851_v52  ;;  %vm418_vm1 = vcmask 293888  }
  0x24   : > { %v330_v6 = vunpack.c.0.s8 %v329_v4  ;;  %s954_s19 = scalar_lea.vmem %s1066_s0, %s672_s9  ;;  %402 = vmatprep.mubr.f32.mxu0 %v335_v15  ;;  %s1017_s8 = scalar_lea.hbm %s1069_s3, %s673_s30 }
  0x25   : > { %v324_v9 = vld [vmem:[%s954_s19 + $0xf8] sm:$0xff]  ;;  %v323_v11 = vld [vmem:[%s954_s19 + $0xf0] sm:$0xff]  ;;  %v322_v13 = vld [vmem:[%s954_s19 + $0xe8] sm:$0xff]  ;;  %s974_s27 = scalar_lea.vmem %s1067_s1, %s709_s21  ;;  %s772_s9 = scalar_lea.vmem %s1012_s29, 128 }
  0x26   : > { %v956_v8 = vsub.s32 %v330_v6, %v332_v5  ;;  %v308_v10 = vld [vmem:[%s954_s19 + $0x78] sm:$0xff]  ;;  %674 = vmatprep.subr.mxu0 %v324_v9  ;;  %v307_v12 = vld [vmem:[%s954_s19 + $0x70] sm:$0xff]  ;;  %v306_v14 = vld [vmem:[%s954_s19 + $0x68] sm:$0xff]  ;;  %p773_p1 = scmp.ne.s32.totalorder %s1012_s29, %s772_s9  ;;  %s776_s10 = sshll.u32 %s852_s15, 4  ;;  %s777_s10 = int_to_ptr.vmem [resolvable:$false] %s776_s10 }
  0x27   : > { %675 = vmatpush3.msra.mxu0 %v308_v10  ;;  %v321_v16 = vld [vmem:[%s954_s19 + $0xe0] sm:$0xff]  ;;  %v320_v18 = vld [vmem:[%s954_s19 + $0xd8] sm:$0xff]  ;;  %v319_v20 = vld [vmem:[%s954_s19 + $0xd0] sm:$0xff]  ;;  %s778_s11 = scalar_lea.vmem %s777_s10, 256  ;;  %p779_p4 = scmp.lt.s32.totalorder %s1012_s29, %s777_s10 }
  0x28   : > { %676 = vmatprep.subr.mxu0 %v323_v11  ;;  %v305_v17 = vld [vmem:[%s954_s19 + $0x60] sm:$0xff]  ;;  %v304_v19 = vld [vmem:[%s954_s19 + $0x58] sm:$0xff]  ;;  %v303_v21 = vld [vmem:[%s954_s19 + $0x50] sm:$0xff]  ;;  %p774_p2 = pnand %p773_p1, %p915_p5  ;;  %p780_p6 = scmp.lt.s32.totalorder %s778_s11, %s772_s9 }
  0x29   : > { %677 = vmatpush3.msra.mxu0 %v307_v12  ;;  %v318_v22 = vld [vmem:[%s954_s19 + $0xc8] sm:$0xff]  ;;  %v416_v25 = vld [vmem:[%s974_s27 + $0x40] sm:$0xf]  ;;  %v415_v26 = vld [vmem:[%s974_s27 + $0x38] sm:$0xff] }
  0x2a   : > { %678 = vmatprep.subr.mxu0 %v322_v13  ;;  %v302_v23 = vld [vmem:[%s954_s19 + $0x48] sm:$0xff]  ;;  %v414_v27 = vld [vmem:[%s974_s27 + $0x30] sm:$0xff]  ;;  %v317_v28 = vld [vmem:[%s954_s19 + $0xc0] sm:$0xff]  ;;  %p775_p3 = pneg %p774_p2  ;;  %p781_p7 = por %p780_p6, %p779_p4 }
  0x2b   : > { %679 = vmatpush3.msra.mxu0 %v306_v14  ;;  %v417_v24 = vld [vmem:[%s974_s27 + $0x48] sm:$0xf]  ;;  %v301_v30 = vld [vmem:[%s954_s19 + $0x40] sm:$0xff]  ;;  %v316_v31 = vld [vmem:[%s954_s19 + $0xb8] sm:$0xff] }
  0x2c   : > { %680 = vmatprep.subr.mxu0 %v321_v16  ;;  %662 = vmatprep.subr.msk.mxu1 %vm422_vm0, %v417_v24  ;;  %v413_v29 = vld [vmem:[%s974_s27 + $0x28] sm:$0xff]  ;;  %v300_v32 = vld [vmem:[%s954_s19 + $0x38] sm:$0xff]  ;;  %v315_v33 = vld [vmem:[%s954_s19 + $0xb0] sm:$0xff]  ;;  %p782_p8 = pnand %p781_p7, %p775_p3 }
  0x2d   : > { %681 = vmatpush3.msra.mxu0 %v305_v17  ;;  %663 = vmatpush1.msk.msra.mxu1 %vm422_vm0, %v416_v25  ;;  %v299_v34 = vld [vmem:[%s954_s19 + $0x30] sm:$0xff]  ;;  %v314_v35 = vld [vmem:[%s954_s19 + $0xa8] sm:$0xff]  ;;  %v313_v37 = vld [vmem:[%s954_s19 + $0xa0] sm:$0xff] }
  0x2e   : > { %682 = vmatprep.subr.mxu0 %v320_v18  ;;  %453 = vmatprep.subr.mxu1 %v415_v26  ;;  %v298_v36 = vld [vmem:[%s954_s19 + $0x28] sm:$0xff]  ;;  %v297_v38 = vld [vmem:[%s954_s19 + $0x20] sm:$0xff]  ;;  %v312_v39 = vld [vmem:[%s954_s19 + $0x98] sm:$0xff] }
  0x2f   : > { %683 = vmatpush3.msra.mxu0 %v304_v19  ;;  %454 = vmatpush1.msra.mxu1 %v414_v27  ;;  %v296_v40 = vld [vmem:[%s954_s19 + $0x18] sm:$0xff]  ;;  %v311_v41 = vld [vmem:[%s954_s19 + $0x90] sm:$0xff]  ;;  %v310_v43 = vld [vmem:[%s954_s19 + $0x88] sm:$0xff] }
  0x30   : > { %684 = vmatprep.subr.mxu0 %v319_v20  ;;  %455 = vmatprep.subr.mxu1 %v413_v29  ;;  %v295_v42 = vld [vmem:[%s954_s19 + $0x10] sm:$0xff]  ;;  %v294_v44 = vld [vmem:[%s954_s19 + $0x8] sm:$0xff]  ;;  %v309_v45 = vld [vmem:[%s954_s19 + $0x80] sm:$0xff] }
  0x31   : > { %685 = vmatpush3.msra.mxu0 %v303_v21  ;;  %v293_v46 = vld [vmem:[%s954_s19] sm:$0xff]  ;;  %v411_v48 = vld [vmem:[%s974_s27 + $0x18] sm:$0xff]  ;;  %v410_v49 = vld [vmem:[%s974_s27 + $0x10] sm:$0xff] }
  0x32   : > { %686 = vmatprep.subr.mxu0 %v318_v22  ;;  %v412_v47 = vld [vmem:[%s974_s27 + $0x20] sm:$0xff]  ;;  %v409_v50 = vld [vmem:[%s974_s27 + $0x8] sm:$0xff] }
  0x33   : > { %687 = vmatpush3.msra.mxu0 %v302_v23  ;;  %456 = vmatpush1.msra.mxu1 %v412_v47  ;;  %v408_v51 = vld [vmem:[%s974_s27] sm:$0xff] }
  0x34   : > { %688 = vmatprep.subr.mxu0 %v317_v28  ;;  %457 = vmatprep.subr.mxu1 %v411_v48 }
  0x35   : > { %689 = vmatpush3.msra.mxu0 %v301_v30  ;;  %458 = vmatpush1.msra.mxu1 %v410_v49 }
  0x36   : > { %690 = vmatprep.subr.mxu0 %v316_v31  ;;  %459 = vmatprep.subr.mxu1 %v409_v50 }
  0x37   : > { %691 = vmatpush3.msra.mxu0 %v300_v32  ;;  %460 = vmatpush1.msra.mxu1 %v408_v51 }
  0x38   : > { %692 = vmatprep.subr.mxu0 %v315_v33 }
  0x39   : > { %693 = vmatpush3.msra.mxu0 %v299_v34 }
  0x3a   : > { %694 = vmatprep.subr.mxu0 %v314_v35 }
  0x3b   : > { %695 = vmatpush3.msra.mxu0 %v298_v36 }
  0x3c   : > { %696 = vmatprep.subr.mxu0 %v313_v37 }
  0x3d   : > { %697 = vmatpush3.msra.mxu0 %v297_v38 }
  0x3e   : > { %698 = vmatprep.subr.mxu0 %v312_v39 }
  0x3f   : > { %699 = vmatpush3.msra.mxu0 %v296_v40 }
  0x40   : > { %700 = vmatprep.subr.mxu0 %v311_v41 }
  0x41   : > { %701 = vmatpush3.msra.mxu0 %v295_v42 }
  0x42   : > { %702 = vmatprep.subr.mxu0 %v310_v43 }
  0x43   : > { %703 = vmatpush3.msra.mxu0 %v294_v44 }
  0x44   : > { %704 = vmatprep.subr.mxu0 %v309_v45 }
  0x45   : > { %705 = vmatpush3.msra.mxu0 %v293_v46 }
  0x46   : > { %403 = vmatmul.mubr.f32.vlgmr.msra.gmra.mxu0 %v949_v7 }
 0x106   : > { %v706_v53 = vpop.f32.mrf.mxu0 }
 0x108   : > { %v707_v54 = vpop.f32.mrf.mxu0 }
 0x109   : > { %v708_v55 = vadd.f32 %v707_v54, %v706_v53 }
 0x10b   : > { %664 = vmatmul.mubr.msk.f32.vlgmr.msra.gmra.mxu1 %vm418_vm1, %v708_v55 }
 0x1cb   : > { %v495_v56 = vpop.f32.mrf.mxu1 }
 0x1cc   : > { %v500_v58 = vmax.f32 %v495_v56, 0.0 }
 0x1cd   : > { %v497_v57 = vpop.f32.mrf.mxu1 }
 0x1ce   : > { %v501_v59 = vmax.f32 %v497_v57, 0.0 }
 0x1d0   : > { %v504_v60 = vcombine.low %v500_v58, %v501_v59 }
 0x1d2   : > { %v511_v61 = vrot.slane %v504_v60, %v956_v8  ;;  %665 = vst.sshfl [vmem:[%s278_s28] sm:$0x33 pattern:$0x76325410] %v504_v60 }
 0x1d4   : > { %v512_v62 = vcombine.high %v511_v61, %v511_v61 }
 0x1d6   : > { %516 = vst [vmem:[%s278_s28 + $0x4] sm:$0xf] %v512_v62 }
 0x1d7   : > { %785 = shalt.err (!%p782_p8)
}
 0x1d8   : > { %s786_s6 = scalar_lea.hbm %s1017_s8, 128  ;;  %s790_s21 = scalar_lea.hbm %s1069_s3, 512 }
 0x1d9   : > { %p787_p10 = scmp.ne.s32.totalorder %s1017_s8, %s786_s6  ;;  %p791_p13 = scmp.lt.s32.totalorder %s1017_s8, %s1069_s3 }
 0x1da   : > { %p792_p0 = scmp.lt.s32.totalorder %s790_s21, %s786_s6 }
 0x1db   : > { %p788_p11 = pnand %p787_p10, %p915_p5 }
 0x1dc   : > { %p793_p1 = por %p792_p0, %p791_p13 }
 0x1dd   : > { %p789_p12 = pneg %p788_p11 }
 0x1df   : > { %p794_p2 = pnand %p793_p1, %p789_p12 }
 0x1e1   : > { %797 = shalt.err (!%p794_p2)
}
 0x1e2   : > { %s853_s27 = smov 64   ;;  %s854_s28 = smov 256  }
 0x1e3   : > { %s855_s30 = smov 4  }
 0x1e4   : > { %710 = dma.vmem_to_hbm [thread:$0]  (%p915_p5), %s1012_s29, 128, %s1017_s8, %s1021_s7, %s853_s27, %s854_s28, %s855_s30  }
 0x1e5 PF: > { %p716_p3 = scmp.ge.s32.totalorder %s848_s17, 2  ;;  %s551_s4 = sand.u32 1, %s828_s12  }
 0x1e6   : > { %s552_s5 = scalar_lea.sflag [#allocation4], %s551_s4 }
 0x1e7   : > { %p713_p4 = pnand %p716_p3, %p926_p9 }
 0x1e9   : > { %p714_p6 = pneg %p713_p4 }
 0x1eb   : > { %823 = dma.done.wait (%p714_p6), %s552_s5, 128  }
 0x1ec   : > { %825 = vsyncadd (%p714_p6), %s552_s5, 4294967168  ;;  %s16_s17 = sadd.s32 1, %s848_s17   ;;  %s1072_s12 = smov %s832_s13 }
 0x1ed   : > { %p13_p7 = scmp.ge.s32.totalorder %s16_s17, 6   ;;  %s1073_s13 = smov %s836_s14 }
 0x1ee   : > { %s1074_s14 = smov %s924_s24  ;;  %s1075_s15 = smov %s844_s16 }
 0x1ef   : > { %s1076_s16 = smov %s1078_s20  ;;  %15 = sbr.rel (!%p13_p7) target bundleno = 4 (0x4), region = 119 }
 0x1f4   :  { %557 = vsyncpa [#allocation4], 1 }
 0x1f5   :  { %559 = vsyncpa [#allocation4 + $0x1], 1 }

</bundles_post_ra>
